<compile_context>
chip_gen: v6e
topology: v6e:2x2x1
jax: 0.10.0
libtpu: 0.0.40
codegen_flags: <defaults>
</compile_context>

<pallas_src>
import functools

import jax
import jax.numpy as jnp
from jax.experimental import pallas as pl
from jax.experimental.pallas import tpu as pltpu

_T = 2.0
_EPS = 1e-7


def _round_up(x, m):
    return ((x + m - 1) // m) * m


def _vmem_capacity_bytes():
    """Generation-aware VMEM capacity (v5e/v6e: 128 MiB, v7x: 64 MiB/TC); safe fallback."""
    try:
        info = pltpu.get_tpu_info()
        cap = getattr(info, "vmem_capacity_bytes", None)
        if cap:
            return int(cap)
    except Exception:
        pass
    return 64 << 20  # conservative default (v7x per-TensorCore VMEM)


def _kl_loss_kernel(pred_ref, label_ref, out_ref, *, batch_total, block_rows):
    """One batch tile -> one partial KL sum, broadcast into a lane-dense (1,8,128) out block."""
    inv_t = 1.0 / _T
    p = pred_ref[...].astype(jnp.float32) * inv_t   # (TB, C)
    l = label_ref[...].astype(jnp.float32) * inv_t  # (TB, C)

    # log_softmax(pred / T) along the class (lane) axis.
    p_max = jnp.max(p, axis=1, keepdims=True)
    p_shift = p - p_max
    log_z_p = jnp.log(jnp.sum(jnp.exp(p_shift), axis=1, keepdims=True))
    log_predict = p_shift - log_z_p                  # (TB, C)

    # softmax(label / T) + eps, with a per-row reciprocal instead of an elementwise divide.
    # (exact reciprocal: the per-row approx=True saving is negligible and risks the 1e-5 tol)
    l_max = jnp.max(l, axis=1, keepdims=True)
    l_exp = jnp.exp(l - l_max)
    row_sum = jnp.sum(l_exp, axis=1, keepdims=True)
    target = l_exp * pl.reciprocal(row_sum) + _EPS   # (TB, C)

    # Keep the elementwise log(target) so semantics match PyTorch's (softmax + 1e-7).log()
    # exactly; a per-row log-softmax rewrite would drop the eps inside the log.
    kl = target * (jnp.log(target) - log_predict)    # (TB, C)

    # Reduce the class axis first, then mask at ROW granularity (only emitted when the batch
    # is not a tile multiple). jnp.where is a select, so garbage/NaN rows from the ragged
    # last block's undefined DMA contents are dropped safely.
    row_kl = jnp.sum(kl, axis=1, keepdims=True)      # (TB, 1)
    if batch_total % block_rows != 0:
        row_ids = pl.program_id(0) * block_rows + jax.lax.broadcasted_iota(
            jnp.int32, row_kl.shape, 0)
        row_kl = jnp.where(row_ids < batch_total, row_kl, 0.0)

    block_sum = jnp.sum(row_kl)
    # Lane-dense, unmasked full-vreg store; wrapper only reads [0, 0] of each block.
    out_ref[...] = jnp.full(out_ref.shape, block_sum, dtype=jnp.float32)


def kl_loss(pred, label, *, block_rows=None):
    """Pallas TPU implementation of KLLoss.forward(pred, label). Returns a scalar f32."""
    assert pred.shape == label.shape and pred.ndim == 2
    B, C = pred.shape
    in_itemsize = jnp.dtype(pred.dtype).itemsize
    sub = max(8, 32 // in_itemsize)          # min sublane tile: f32 -> 8, bf16/f16 -> 16

    vmem_cap = _vmem_capacity_bytes()
    # Per-row VMEM cost: 2 inputs x 2 pipeline buffers + ~12 live full-row f32 intermediates.
    bytes_per_row = 2 * 2 * C * in_itemsize + 12 * C * 4

    if block_rows is None:
        # Bandwidth target: ~4 MiB per input per grid step (per-step DMA >> grid overhead,
        # ~86% of HBM roofline per the measured tiling curve), clamped by a gen-aware VMEM
        # budget so the working set fits v7x's 64 MiB/TC without spills.
        rows_bw = (4 << 20) // max(C * in_itemsize, 1)
        rows_vmem = int(0.6 * vmem_cap) // max(bytes_per_row, 1)
        cand = max(sub, min(rows_bw, rows_vmem))
        cand = (cand // sub) * sub
        if cand >= B:
            # Whole batch fits in one tile.
            if B >= 4 * sub and B * C * in_itemsize >= (2 << 20):
                # Split into >= 2 grid steps so both v7x TensorCores get work.
                block_rows = _round_up(-(-B // 2), sub)
                block_rows = min(block_rows, (B // sub) * sub)
            else:
                block_rows = B          # full-extent block: always a legal block shape
        else:
            block_rows = cand
    assert block_rows == B or block_rows % sub == 0, (
        f"block_rows={block_rows} must be a multiple of {sub} for dtype {pred.dtype} "
        f"(or equal the full batch {B})")

    num_blocks = pl.cdiv(B, block_rows)
    # NOTE: no jnp.pad of pred/label -- the ragged last block is handled by the in-kernel
    # row mask; padding would re-read and re-write both full arrays in HBM.

    # Scoped-VMEM request: per-step footprint + >=50% headroom, capped below physical VMEM.
    footprint = block_rows * bytes_per_row
    vmem_limit = footprint + max(footprint // 2, 4 << 20)
    vmem_limit = int(min(max(vmem_limit, 32 << 20), vmem_cap - (8 << 20)))

    partials = pl.pallas_call(
        functools.partial(_kl_loss_kernel, batch_total=B, block_rows=block_rows),
        out_shape=jax.ShapeDtypeStruct((num_blocks, 8, 128), jnp.float32),
        grid=(num_blocks,),
        in_specs=[
            pl.BlockSpec((block_rows, C), lambda i: (i, 0)),
            pl.BlockSpec((block_rows, C), lambda i: (i, 0)),
        ],
        out_specs=pl.BlockSpec((1, 8, 128), lambda i: (i, 0, 0)),
        compiler_params=pltpu.CompilerParams(
            dimension_semantics=("parallel",),  # independent batch tiles -> megacore on v7x
            vmem_limit_bytes=vmem_limit,
        ),
    )(pred, label)

    # Finalize with the true batch size in the wrapper.
    total = jnp.sum(partials[:, 0, 0])
    return (_T * _T) * total / jnp.float32(B)


def _kl_loss_ref(pred, label):
    """Pure-JAX reference matching the PyTorch module (compute in f32)."""
    T = 2.0
    pred = pred.astype(jnp.float32)
    label = label.astype(jnp.float32)
    predict = jax.nn.log_softmax(pred / T, axis=1)
    target = jax.nn.softmax(label / T, axis=1) + 1e-7
    return T * T * jnp.sum(target * (jnp.log(target) - predict)) / pred.shape[0]


if __name__ == "__main__":
    key = jax.random.PRNGKey(0)
    k1, k2, k3, k4, k5, k6 = jax.random.split(key, 6)

    # Case 1: f32, B not a multiple of the tile, explicit small tile -> 3-block ragged grid
    # exercising the no-pad path, per-block partial sums, and the last-block row mask.
    B1, C1 = 20, 32
    pred1 = jax.random.normal(k1, (B1, C1), dtype=jnp.float32)
    label1 = jax.random.normal(k2, (B1, C1), dtype=jnp.float32)
    loss1 = kl_loss(pred1, label1, block_rows=8)
    jax.block_until_ready(loss1)
    ref1 = _kl_loss_ref(pred1, label1)
    assert jnp.allclose(loss1, ref1, rtol=1e-5, atol=1e-5), (loss1, ref1)

    # Case 2: bf16 inputs (half the HBM traffic on mem-bound v5e/v6e), auto tile sizing.
    B2, C2 = 64, 128
    pred2 = jax.random.normal(k3, (B2, C2), dtype=jnp.float32).astype(jnp.bfloat16)
    label2 = jax.random.normal(k4, (B2, C2), dtype=jnp.float32).astype(jnp.bfloat16)
    loss2 = kl_loss(pred2, label2)
    jax.block_until_ready(loss2)
    ref2 = _kl_loss_ref(pred2, label2)
    assert jnp.allclose(loss2, ref2, rtol=1e-5, atol=1e-5), (loss2, ref2)

    # Case 3: bf16 with a batch that is not 16-sublane aligned -> single full-extent block.
    B3, C3 = 37, 128
    pred3 = jax.random.normal(k5, (B3, C3), dtype=jnp.float32).astype(jnp.bfloat16)
    label3 = jax.random.normal(k6, (B3, C3), dtype=jnp.float32).astype(jnp.bfloat16)
    loss3 = kl_loss(pred3, label3)
    jax.block_until_ready(loss3)
    ref3 = _kl_loss_ref(pred3, label3)
    assert jnp.allclose(loss3, ref3, rtol=1e-5, atol=1e-5), (loss3, ref3)

    print("KERNEL_OK")
</pallas_src>

<mosaic_0001>
module attributes {stable_mosaic.version = 11 : i64} {
  func.func @_kl_loss_kernel(%arg0: i32, %arg1: memref<8x32xf32, #tpu.memory_space<vmem>>, %arg2: memref<8x32xf32, #tpu.memory_space<vmem>>, %arg3: memref<1x8x128xf32, #tpu.memory_space<vmem>>) attributes {dimension_semantics = [#tpu.dimension_semantics<parallel>], iteration_bounds = array<i64: 3>, scalar_prefetch = 0 : i64, scratch_operands = 0 : i64, tpu.core_type = #tpu.core_type<tc>, window_params = [{transform_indices = @transform_0, window_bounds = array<i64: 8, 32>}, {transform_indices = @transform_1, window_bounds = array<i64: 8, 32>}, {transform_indices = @transform_2, window_bounds = array<i64: 1, 8, 128>}]} {
    %c0 = arith.constant 0 : index
    %c0_0 = arith.constant 0 : index
    %0 = vector.load %arg1[%c0, %c0_0] : memref<8x32xf32, #tpu.memory_space<vmem>>, vector<8x32xf32>
    %cst = arith.constant 5.000000e-01 : f32
    %1 = vector.broadcast %cst : f32 to vector<8x32xf32>
    %2 = arith.mulf %0, %1 : vector<8x32xf32>
    %c0_1 = arith.constant 0 : index
    %c0_2 = arith.constant 0 : index
    %3 = vector.load %arg2[%c0_1, %c0_2] : memref<8x32xf32, #tpu.memory_space<vmem>>, vector<8x32xf32>
    %cst_3 = arith.constant 5.000000e-01 : f32
    %4 = vector.broadcast %cst_3 : f32 to vector<8x32xf32>
    %5 = arith.mulf %3, %4 : vector<8x32xf32>
    %cst_4 = arith.constant dense<0xFF800000> : vector<8xf32>
    %6 = vector.multi_reduction <maximumf>, %2, %cst_4 [1] : vector<8x32xf32> to vector<8xf32>
    %7 = vector.shape_cast %6 : vector<8xf32> to vector<8x1xf32>
    %8 = vector.broadcast %7 : vector<8x1xf32> to vector<8x32xf32>
    %9 = arith.subf %2, %8 : vector<8x32xf32>
    %10 = math.exp %9 : vector<8x32xf32>
    %cst_5 = arith.constant dense<0.000000e+00> : vector<8xf32>
    %11 = vector.multi_reduction <add>, %10, %cst_5 [1] : vector<8x32xf32> to vector<8xf32>
    %12 = vector.shape_cast %11 : vector<8xf32> to vector<8x1xf32>
    %13 = math.log %12 : vector<8x1xf32>
    %14 = vector.broadcast %13 : vector<8x1xf32> to vector<8x32xf32>
    %15 = arith.subf %9, %14 : vector<8x32xf32>
    %cst_6 = arith.constant dense<0xFF800000> : vector<8xf32>
    %16 = vector.multi_reduction <maximumf>, %5, %cst_6 [1] : vector<8x32xf32> to vector<8xf32>
    %17 = vector.shape_cast %16 : vector<8xf32> to vector<8x1xf32>
    %18 = vector.broadcast %17 : vector<8x1xf32> to vector<8x32xf32>
    %19 = arith.subf %5, %18 : vector<8x32xf32>
    %20 = math.exp %19 : vector<8x32xf32>
    %cst_7 = arith.constant dense<0.000000e+00> : vector<8xf32>
    %21 = vector.multi_reduction <add>, %20, %cst_7 [1] : vector<8x32xf32> to vector<8xf32>
    %22 = vector.shape_cast %21 : vector<8xf32> to vector<8x1xf32>
    %23 = tpu.reciprocal %22 : vector<8x1xf32> -> vector<8x1xf32>
    %24 = vector.broadcast %23 : vector<8x1xf32> to vector<8x32xf32>
    %25 = arith.mulf %20, %24 : vector<8x32xf32>
    %cst_8 = arith.constant 1.000000e-07 : f32
    %26 = vector.broadcast %cst_8 : f32 to vector<8x32xf32>
    %27 = arith.addf %25, %26 : vector<8x32xf32>
    %28 = math.log %27 : vector<8x32xf32>
    %29 = arith.subf %28, %15 : vector<8x32xf32>
    %30 = arith.mulf %27, %29 : vector<8x32xf32>
    %cst_9 = arith.constant dense<0.000000e+00> : vector<8xf32>
    %31 = vector.multi_reduction <add>, %30, %cst_9 [1] : vector<8x32xf32> to vector<8xf32>
    %32 = vector.shape_cast %31 : vector<8xf32> to vector<8x1xf32>
    %c8_i32 = arith.constant 8 : i32
    %33 = arith.muli %arg0, %c8_i32 : i32
    %34 = tpu.iota {dimensions = array<i32: 0>} : vector<8x1xi32>
    %35 = vector.broadcast %33 : i32 to vector<8x1xi32>
    %36 = arith.addi %35, %34 : vector<8x1xi32>
    %c20_i32 = arith.constant 20 : i32
    %37 = vector.broadcast %c20_i32 : i32 to vector<8x1xi32>
    %38 = arith.cmpi slt, %36, %37 : vector<8x1xi32>
    %cst_10 = arith.constant 0.000000e+00 : f32
    %39 = vector.broadcast %cst_10 : f32 to vector<8x1xf32>
    %40 = arith.select %38, %32, %39 : vector<8x1xi1>, vector<8x1xf32>
    %41 = vector.shape_cast %40 : vector<8x1xf32> to vector<1x8x1xf32>
    %cst_11 = arith.constant dense<0.000000e+00> : vector<1xf32>
    %42 = vector.multi_reduction <add>, %41, %cst_11 [1, 2] : vector<1x8x1xf32> to vector<1xf32>
    %43 = vector.shape_cast %42 : vector<1xf32> to vector<1x1x1xf32>
    %44 = vector.extract %43[0, 0, 0] : f32 from vector<1x1x1xf32>
    %45 = vector.broadcast %44 : f32 to vector<1x8x128xf32>
    %c0_12 = arith.constant 0 : index
    %c0_13 = arith.constant 0 : index
    %c0_14 = arith.constant 0 : index
    %46 = vector.load %arg3[%c0_12, %c0_13, %c0_14] : memref<1x8x128xf32, #tpu.memory_space<vmem>>, vector<1x8x128xf32>
    tpu.vector_store %arg3[%c0_12, %c0_13, %c0_14], %45 {strides = array<i32>} : memref<1x8x128xf32, #tpu.memory_space<vmem>>, vector<1x8x128xf32>,
    return
  }
  func.func @transform_0(%arg0: i32) -> (i32, i32) {
    %c0_i32 = arith.constant 0 : i32
    %c0_i32_0 = arith.constant 0 : i32
    return %arg0, %c0_i32 : i32, i32
  }
  func.func @transform_1(%arg0: i32) -> (i32, i32) {
    %c0_i32 = arith.constant 0 : i32
    %c0_i32_0 = arith.constant 0 : i32
    return %arg0, %c0_i32 : i32, i32
  }
  func.func @transform_2(%arg0: i32) -> (i32, i32, i32) {
    %c0_i32 = arith.constant 0 : i32
    %c0_i32_0 = arith.constant 0 : i32
    %c0_i32_1 = arith.constant 0 : i32
    return %arg0, %c0_i32, %c0_i32_0 : i32, i32, i32
  }
}

</mosaic_0001>

<bundles_post_ra>
// kernel: tpu_custom_call.1
= control target key start
LH: loop header
LB: loop body
LE: loop exit
PB: predicated region body
PF: predicated region fallthrough
CT: control target
= control target key end

     0   :  { %7 = vsyncpa [#allocation3], 0  ;;  %s791_s0 = inlined_call_operand.hbm [shape: f32[20,32], index: 0, kind: input, shape index: {}]   ;;  %s792_s1 = inlined_call_operand.hbm [shape: f32[20,32], index: 1, kind: input, shape index: {}]   ;;  %s793_s2 = inlined_call_operand.hbm [shape: f32[3,8,128], index: 2, kind: output, shape index: {}]  }
   0x1   :  { %9 = vsyncpa [#allocation3 + $0x1], 0 }
   0x2   :  { %10 = vsyncpa [#allocation6], 0 }
   0x3   :  { %12 = vsyncpa [#allocation6 + $0x1], 0 }
   0x4   :  { %13 = vsyncpa [#allocation4], 0 }
   0x5   :  { %15 = vsyncpa [#allocation4 + $0x1], 0  ;;  %s582_s9 = smov 0   ;;  %s584_s10 = smov 0  }
   0x6   :  { %s586_s11 = smov 0   ;;  %s588_s12 = smov 0  }
   0x7 LB: > { %s603_s13 = sadd.s32 4294967295, %s562_s12   ;;  %s359_s14 = sadd.s32 4294967294, %s562_s12   ;;  %s562_s12 = sphi %s588_s12, %s811_s12   ;;  %s558_s11 = sphi %s586_s11, %s810_s11   ;;  %s554_s10 = sphi %s584_s10, %s809_s10   ;;  %s550_s9 = sphi %s582_s9, %s808_s9  }
   0x8   : > { %s607_s15 = sadd.s32 1, %s562_s12   ;;  %s28_s16 = sadd.s32 1, %s558_s11 }
   0x9   : > { %s25_s17 = ssub.s32 %s562_s12, %s607_s15  ;;  %p35_p0 = scmp.ne.s32.totalorder %s558_s11, %s554_s10 }
   0xa   : > { %p26_p1 = scmp.eq.s32.totalorder %s25_s17, 0  ;;  %p36_p2 = scmp.eq.s32.totalorder %s562_s12, 0 }
   0xb   : > { %p41_p3 = scmp.ne.s32.totalorder %s554_s10, %s550_s9  ;;  %p42_p4 = scmp.eq.s32.totalorder %s603_s13, 0 }
   0xc   : > { %s619_s18 = scalar_select %p26_p1, %s558_s11, %s28_s16  }
   0xd   : > { %p621_p5 = por %p36_p2, %p35_p0  ;;  %p625_p6 = por %p42_p4, %p41_p3 }
   0xe   : > { %p91_p7 = scmp.eq.s32.totalorder %s603_s13, 2  ;;  %p97_p8 = scmp.eq.s32.totalorder %s359_s14, 2 }
   0xf   : > { %s797_s20 = scalar_select %p625_p6, 1, 0 }
  0x10   : > { %p394_p9 = scmp.lt.s32.totalorder %s562_s12, 3  ;;  %p631_p10 = por %p91_p7, %p35_p0 }
  0x11   : > { %p635_p11 = por %p97_p8, %p41_p3  ;;  %s640_s23 = sand.u32 1, %s558_s11  }
  0x12   : > { %s798_s21 = scalar_select %p631_p10, 1, 0 }
  0x13   : > { %s799_s22 = scalar_select %p635_p11, 1, 0 }
  0x14   : > { %s363_s24 = sshll.u32 %s562_s12, 7  ;;  %s362_s25 = sshll.u32 %s640_s23, 3 }
  0x15   : > { %s649_s28 = scalar_lea.hbm %s791_s0, %s363_s24  ;;  %s121_s29 = scalar_lea.vmem [#allocation2], %s362_s25 }
  0x16   : > { %s128_s30 = sshll.u32 %s121_s29, 4  ;;  %p655_p12 = pnand %p394_p9, %p621_p5  ;;  %s659_s30 = int_to_ptr.vmem [resolvable:$true] %s128_s30 }
  0x17   : > { %s118_s4 = scalar_lea.sflag [#allocation3], %s640_s23  ;;  %s438_s5 = scalar_lea.hbm %s649_s28, 128 }
  0x18   : > { %p439_p1 = scmp.ne.s32.totalorder %s649_s28, %s438_s5  ;;  %p440_p2 = pneg %p655_p12 }
  0x19   : > { %s443_s8 = scalar_lea.hbm %s791_s0, 384  ;;  %p444_p5 = scmp.lt.s32.totalorder %s649_s28, %s791_s0 }
  0x1a   : > { %p441_p3 = pnand %p440_p2, %p439_p1  ;;  %p445_p7 = scmp.lt.s32.totalorder %s443_s8, %s438_s5 }
  0x1c   : > { %p442_p4 = pneg %p441_p3  ;;  %p446_p8 = por %p445_p7, %p444_p5 }
  0x1e   : > { %p447_p9 = pnand %p446_p8, %p442_p4 }
  0x20   : > { %450 = shalt.err (!%p447_p9)
}
  0x21   : > { %s451_s17 = scalar_lea.vmem %s659_s30, 128  ;;  %s564_s19 = smov [#allocation2]  }
  0x22   : > { %p452_p13 = scmp.ne.s32.totalorder %s659_s30, %s451_s17  ;;  %s456_s26 = sshll.u32 %s564_s19, 4  ;;  %s457_s26 = int_to_ptr.vmem [resolvable:$false] %s456_s26 }
  0x23   : > { %s458_s27 = scalar_lea.vmem %s457_s26, 256  ;;  %p459_p0 = scmp.lt.s32.totalorder %s659_s30, %s457_s26 }
  0x24   : > { %p454_p1 = pnand %p452_p13, %p440_p2  ;;  %p460_p11 = scmp.lt.s32.totalorder %s458_s27, %s451_s17 }
  0x26   : > { %p455_p3 = pneg %p454_p1  ;;  %p461_p10 = por %p460_p11, %p459_p0 }
  0x28   : > { %p462_p5 = pnand %p461_p10, %p455_p3 }
  0x2a   : > { %465 = shalt.err (!%p462_p5)
}
  0x2b   : > { %386 = dma.hbm_to_vmem [thread:$0]  (!%p655_p12), %s649_s28, 128, %s659_s30, %s118_s4  }
  0x2c   : > { %p801_p13 = scmp.lt.s32.totalorder %s562_s12, 4  ;;  %p802_p4 = scmp.ge.s32.totalorder %s562_s12, 1 }
  0x2d   : > { %s701_s7 = scalar_lea.hbm %s792_s1, %s363_s24  ;;  %s139_s8 = scalar_lea.vmem [#allocation5], %s362_s25 }
  0x2e   : > { %p692_p7 = pnand %p802_p4, %p801_p13  ;;  %s146_s14 = sshll.u32 %s139_s8, 4  ;;  %s147_s14 = int_to_ptr.vmem [resolvable:$true] %s146_s14 }
  0x2f   : > { %s136_s28 = scalar_lea.sflag [#allocation6], %s640_s23  ;;  %s466_s30 = scalar_lea.hbm %s701_s7, 128 }
  0x30   : > { %s803_s29 = scalar_select %p692_p7, 1, 0 }
  0x31   : > { %p467_p10 = scmp.ne.s32.totalorder %s701_s7, %s466_s30  ;;  %s471_s17 = scalar_lea.hbm %s792_s1, 384 }
  0x32   : > { %p472_p8 = scmp.lt.s32.totalorder %s701_s7, %s792_s1  ;;  %p473_p9 = scmp.lt.s32.totalorder %s471_s17, %s466_s30 }
  0x33   : > { %p469_p11 = pnand %p467_p10, %p440_p2 }
  0x34   : > { %p474_p1 = por %p473_p9, %p472_p8 }
  0x35   : > { %p470_p0 = pneg %p469_p11 }
  0x37   : > { %p475_p3 = pnand %p474_p1, %p470_p0 }
  0x39   : > { %478 = shalt.err (!%p475_p3)
}
  0x3a   : > { %s479_s25 = scalar_lea.vmem %s147_s14, 128  ;;  %s565_s23 = smov [#allocation5]  }
  0x3b   : > { %p480_p5 = scmp.ne.s32.totalorder %s147_s14, %s479_s25  ;;  %s484_s26 = sshll.u32 %s565_s23, 4  ;;  %s485_s26 = int_to_ptr.vmem [resolvable:$false] %s484_s26 }
  0x3c   : > { %s486_s27 = scalar_lea.vmem %s485_s26, 256  ;;  %p487_p10 = scmp.lt.s32.totalorder %s147_s14, %s485_s26 }
  0x3d   : > { %p482_p13 = pnand %p480_p5, %p440_p2  ;;  %p488_p11 = scmp.lt.s32.totalorder %s486_s27, %s479_s25 }
  0x3f   : > { %p483_p4 = pneg %p482_p13  ;;  %p489_p6 = por %p488_p11, %p487_p10 }
  0x41   : > { %p490_p7 = pnand %p489_p6, %p483_p4 }
  0x43   : > { %493 = shalt.err (!%p490_p7)
}
  0x44   : > { %389 = dma.hbm_to_vmem [thread:$0]  (!%p655_p12), %s701_s7, 128, %s147_s14, %s136_s28  }
  0x45   : > { %p804_p0 = scmp.ne.s32.totalorder %s803_s29, 0 }
  0x46   : > { %s727_s5 = sand.u32 (!%p804_p0), 1, %s554_s10   ;;  %p805_p6 = scmp.ne.s32.totalorder (!%p804_p0), %s797_s20, 0 }
  0x47   : > { %155 = sbr.rel (%p804_p0) target bundleno = 771 (0x303), region = 28  ;;  %s730_s6 = sshll.u32 (!%p804_p0), %s727_s5, 3 }
  0x48   : > { %s158_s8 = scalar_lea.sflag (!%p804_p0), [#allocation3], %s727_s5  ;;  %s161_s30 = scalar_lea.vmem (!%p804_p0), [#allocation2], %s730_s6 }
  0x4c   : > { %537 = dma.done.wait (%p805_p6), %s158_s8, 128  }
  0x4d   : > { %539 = vsyncadd (%p805_p6), %s158_s8, 4294967168  ;;  %s167_s3 = scalar_lea.sflag [#allocation6], %s727_s5  ;;  %s170_s29 = scalar_lea.vmem [#allocation5], %s730_s6 }
  0x4e   : > { %541 = dma.done.wait (%p805_p6), %s167_s3, 128  }
  0x4f   : > { %543 = vsyncadd (%p805_p6), %s167_s3, 4294967168  ;;  %v198_v0 = vld [vmem:[%s170_s29] sm:$0xff]  ;;  %vm200_vm0 = vcmask 261120   ;;  %v196_v1 = vld [vmem:[%s161_s30] sm:$0xff]  ;;  %v233_v29 = vlaneseq  ;;  %s370_s20 = sshll.u32 %s603_s13, 3  ;;  %vm239_vm2 = vcmask 7168  }
  0x50   : > { %v199_v2 = vmul.f32 0.5, %v198_v0  ;;  %v197_v3 = vmul.f32 0.5, %v196_v1  ;;  %v235_v31 = vstv %s370_s20  ;;  %s195_s7 = scalar_lea.vmem [#allocation7], %s730_s6  ;;  %s372_s28 = sshll.u32 %s603_s13, 7 }
  0x51   : > { %v234_v30 = vshrl.u32 %v233_v29, 7  ;;  %s266_s14 = sshll.u32 %s195_s7, 4  ;;  %s264_s24 = scalar_lea.hbm %s793_s2, %s372_s28  ;;  %s752_s14 = int_to_ptr.vmem [resolvable:$true] %s266_s14 }
  0x52   : > { %v213_v4 = vsel %vm200_vm0, %v199_v2, -inf  ;;  %v201_v5 = vsel %vm200_vm0, %v197_v3, -inf  ;;  %s253_s19 = scalar_lea.sflag [#allocation4], %s727_s5  ;;  %s494_s25 = scalar_lea.vmem %s752_s14, 128 }
  0x53   : > { %214 = vmax.xlane.f32.xlu0 %v213_v4  ;;  %v236_v32 = vadd.s32 %v235_v31, %v234_v30  ;;  %p495_p12 = scmp.ne.s32.totalorder %s752_s14, %s494_s25  ;;  %p806_p2 = scmp.ne.s32.totalorder %s798_s21, 0 }
  0x54   : > { %s566_s23 = smov [#allocation7]  }
  0x55   : > { %vm237_vm1 = vcmp.lt.s32.totalorder %v236_v32, 20  ;;  %p496_p7 = pnand %p495_p12, %p806_p2  ;;  %s498_s13 = sshll.u32 %s566_s23, 4  ;;  %s499_s13 = int_to_ptr.vmem [resolvable:$false] %s498_s13 }
  0x56   : > { %s500_s26 = scalar_lea.vmem %s499_s13, 256  ;;  %p501_p9 = scmp.lt.s32.totalorder %s752_s14, %s499_s13 }
  0x57   : > { %202 = vmax.xlane.f32.xlu0 %v201_v5  ;;  %p497_p8 = pneg %p496_p7  ;;  %p502_p1 = scmp.lt.s32.totalorder %s500_s26, %s494_s25 }
  0x59   : > { %p503_p3 = por %p502_p1, %p501_p9 }
  0x5b   : > { %p504_p5 = pnand %p503_p3, %p497_p8 }
  0xdc   : > { %v215_v6 = vpop.xlane.xlu0 %214 }
  0xdd   : > { %v216_v7 = vsub.f32 %v199_v2, %v215_v6 }
  0xdf   : > { %v217_v8 = vmul.f32 1.442695, %v216_v7 }
  0xe0   : > { %v203_v9 = vpop.xlane.xlu0 %202 }
  0xe1   : > { %428 = vpow2.f32 %v217_v8  ;;  %v204_v10 = vsub.f32 %v197_v3, %v203_v9 }
  0xe3   : > { %v205_v11 = vmul.f32 1.442695, %v204_v10 }
  0xe5   : > { %430 = vpow2.f32 %v205_v11 }
  0xee   : > { %v429_v12 = vpop.eup %428 }
  0xef   : > { %v219_v13 = vsel %vm200_vm0, %v429_v12, 0.0 }
  0xf0   : > { %220 = vadd.xlane.f32.xlu1 %v219_v13 }
  0xf2   : > { %v431_v14 = vpop.eup %430 }
  0xf3   : > { %v207_v15 = vsel %vm200_vm0, %v431_v14, 0.0 }
  0xf4   : > { %208 = vadd.xlane.f32.xlu1 %v207_v15 }
 0x179   : > { %v221_v16 = vpop.xlane.xlu1 %220 }
 0x17a   : > { %432 = vrcp.f32 %v221_v16 }
 0x17d   : > { %v209_v17 = vpop.xlane.xlu1 %208 }
 0x17e   : > { %434 = vlog2.f32 %v209_v17 }
 0x187   : > { %v433_v18 = vpop.eup %432 }
 0x188   : > { %v223_v19 = vmul.f32 %v433_v18, %v429_v12 }
 0x18a   : > { %v224_v20 = vadd.f32 1e-07, %v223_v19 }
 0x18b   : > { %v435_v21 = vpop.eup %434 }
 0x18c   : > { %436 = vlog2.f32 %v224_v20  ;;  %v211_v22 = vmul.f32 0.6931472, %v435_v21 }
 0x18e   : > { %v212_v24 = vsub.f32 %v204_v10, %v211_v22 }
 0x199   : > { %v437_v23 = vpop.eup %436 }
 0x19a   : > { %v226_v25 = vmul.f32 0.6931472, %v437_v23 }
 0x19c   : > { %v227_v26 = vsub.f32 %v226_v25, %v212_v24 }
 0x19e   : > { %v228_v27 = vmul.f32 %v227_v26, %v224_v20 }
 0x1a0   : > { %v229_v28 = vsel %vm200_vm0, %v228_v27, 0.0 }
 0x1a1   : > { %230 = vadd.xlane.f32.xlu0 %v229_v28 }
 0x22a   : > { %v231_v33 = vpop.xlane.xlu0 %230 }
 0x22b   : > { %v238_v34 = vsel %vm237_vm1, %v231_v33, 0.0 }
 0x22c   : > { %v240_v35 = vsel %vm239_vm2, %v238_v34, 0.0 }
 0x22d   : > { %241 = vadd.xlane.f32.xlu1 %v240_v35 }
 0x2b6   : > { %v242_v36 = vpop.xlane.xlu1 %241 }
 0x2b7   : > { %v243_v37 = vrot.slane %v242_v36, 4 }
 0x2b9   : > { %v244_v38 = vadd.f32 %v243_v37, %v242_v36 }
 0x2bb   : > { %v245_v39 = vrot.slane %v244_v38, 2 }
 0x2bd   : > { %v246_v40 = vadd.f32 %v245_v39, %v244_v38 }
 0x2bf   : > { %v247_v41 = vrot.slane %v246_v40, 1 }
 0x2c1   : > { %v248_v42 = vadd.f32 %v247_v41, %v246_v40 }
 0x2c3   : > { %375 = vpush %v248_v42 }
 0x2f4   : > { %s376_s4 = spop %375 }
 0x2f5   : > { %v250_v43 = vstv %s376_s4 }
 0x2f6   : > { %251 = vst [vmem:[%s195_s7] sm:$0xff] %v250_v43 }
 0x2f7   : > { %507 = shalt.err (!%p504_p5)
}
 0x2f8   : > { %s508_s27 = scalar_lea.hbm %s264_s24, 128  ;;  %s512_s8 = scalar_lea.hbm %s793_s2, 384 }
 0x2f9   : > { %p509_p13 = scmp.ne.s32.totalorder %s264_s24, %s508_s27  ;;  %p513_p11 = scmp.lt.s32.totalorder %s264_s24, %s793_s2 }
 0x2fa   : > { %p514_p0 = scmp.lt.s32.totalorder %s512_s8, %s508_s27 }
 0x2fb   : > { %p510_p4 = pnand %p509_p13, %p806_p2 }
 0x2fc   : > { %p515_p6 = por %p514_p0, %p513_p11 }
 0x2fd   : > { %p511_p10 = pneg %p510_p4 }
 0x2ff   : > { %p516_p12 = pnand %p515_p6, %p511_p10 }
 0x301   : > { %519 = shalt.err (!%p516_p12)
}
 0x302   : > { %381 = dma.vmem_to_hbm [thread:$0]  (%p806_p2), %s752_s14, 128, %s264_s24, %s253_s19  }
 0x303 PF: > { %p395_p7 = scmp.ge.s32.totalorder %s562_s12, 2  ;;  %s278_s29 = sand.u32 1, %s550_s9  }
 0x304   : > { %p807_p8 = scmp.ne.s32.totalorder %s799_s22, 0  ;;  %s279_s20 = scalar_lea.sflag [#allocation4], %s278_s29 }
 0x306   : > { %p391_p9 = pnand %p395_p7, %p807_p8 }
 0x308   : > { %p392_p1 = pneg %p391_p9 }
 0x30a   : > { %545 = dma.done.wait (%p392_p1), %s279_s20, 128  }
 0x30b   : > { %547 = vsyncadd (%p392_p1), %s279_s20, 4294967168  ;;  %p18_p3 = scmp.ge.s32.totalorder %s607_s15, 5   ;;  %s808_s9 = smov %s554_s10 }
 0x30c   : > { %s809_s10 = smov %s558_s11  ;;  %s810_s11 = smov %s619_s18 }
 0x30d   : > { %s811_s12 = smov %s607_s15  ;;  %20 = sbr.rel (!%p18_p3) target bundleno = 7 (0x7), region = 86 }
 0x312   :  { %284 = vsyncpa [#allocation3], 1 }
 0x313   :  { %286 = vsyncpa [#allocation3 + $0x1], 1 }
 0x314   :  { %287 = vsyncpa [#allocation6], 1 }
 0x315   :  { %289 = vsyncpa [#allocation6 + $0x1], 1 }
 0x316   :  { %290 = vsyncpa [#allocation4], 1 }
 0x317   :  { %292 = vsyncpa [#allocation4 + $0x1], 1 }

</bundles_post_ra>
